<compile_context>
chip_gen: v7x
topology: tpu7x:2x2x1
jax: 0.10.0
libtpu: 0.0.40
codegen_flags: <defaults>
</compile_context>

<pallas_src>
import numpy as np
import jax
import jax.numpy as jnp
from jax import lax
from jax.experimental import pallas as pl
from jax.experimental.pallas import tpu as pltpu


_P1_TILE_MAX = 8192          # Pass-1 sample-block width (lane axis)
_Q_TILE_MAX = 1024           # Pass-2 Q-tile edge (multiple of 128 -> lane-dense stores)
_VMEM_LIMIT = 32 * 1024 * 1024


# ----------------------------------------------------------------------------
# Pass 1: unnormalized Gaussian densities, one (K, T1) sample block per step.
#   obs_t : (d, T1)   observations (dimension on sublanes, samples on lanes)
#   linv  : (K, d*d)  row-major flattened L_k^{-1} (lower triangular)
#   c     : (K, d)    c[k, a] = (L_k^{-1} mu_k)_a
#   const : (K, 1)    -0.5 * (d*log(2*pi) + log|Sigma_k|)
#   p_ref : (K, T1)   out: P_raw^T[k, n] = N(obs_n; mu_k, Sigma_k)
# ----------------------------------------------------------------------------
def _p_raw_kernel(obs_t_ref, linv_ref, c_ref, const_ref, p_ref):
    obs_t = obs_t_ref[...]
    linv = linv_ref[...]
    c = c_ref[...]
    const = const_ref[...]

    d = obs_t.shape[0]
    K = linv.shape[0]
    T = obs_t.shape[1]

    # Whitened quadratic form: quad[k, n] = || L_k^{-1}(x_n - mu_k) ||^2,
    # statically unrolled over the tiny 'd' axes (lower-triangular terms only).
    quad = jnp.zeros((K, T), jnp.float32)
    for a in range(d):
        acc = jnp.zeros((K, T), jnp.float32)
        for b in range(a + 1):
            acc = acc + linv[:, a * d + b:a * d + b + 1] * obs_t[b:b + 1, :]
        y = acc - c[:, a:a + 1]
        quad = quad + y * y

    p_ref[...] = jnp.exp(const - 0.5 * quad)


# ----------------------------------------------------------------------------
# Pass 2: one lane-dense Q tile per grid point: Q_ij = P_raw_i @ S' @ P_raw_j^T
#   spt : (K, K)   S'^T  (S' = diag(1/colsum) @ S @ diag(1/colsum))
#   pa  : (K, tm)  P_raw^T block i (Q rows)
#   pb  : (K, tn)  P_raw^T block j (Q cols)
# ----------------------------------------------------------------------------
def _q_tile_kernel(spt_ref, pa_ref, pb_ref, q_ref):
    # tt[k, m] = sum_l S'[l, k] * P_raw[m, l]  == T[m, k]   -> (K, tm)
    tt = jnp.dot(spt_ref[...], pa_ref[...], preferred_element_type=jnp.float32)
    # q[m, n] = sum_k T[m, k] * P_raw[n, k]   (contract axis 0 of both operands)
    q = lax.dot_general(tt, pb_ref[...], (((0,), (0,)), ((), ())),
                        preferred_element_type=jnp.float32)
    q_ref[...] = q.astype(q_ref.dtype)


def discrete_model_forward(obs, t_means, t_covars, t_S_matrix,
                           q_dtype=jnp.float32):
    """Pallas-backed forward pass of Discrete_Model."""
    K, d = t_means.shape
    N = obs.shape[0]
    f32 = jnp.float32

    obs = obs.astype(f32)
    t_means = t_means.astype(f32)
    t_covars = t_covars.astype(f32)
    t_S_matrix = t_S_matrix.astype(f32)

    # --- parameter preprocessing (tiny (K,d,d) linear algebra) --------------
    # TODO(synk): tril / triangular inverse / log|det| stay as plain-JAX glue;
    # at K~4, d~3 there is no Pallas win and no clean MXU mapping.
    L = jnp.tril(t_covars)                                          # (K, d, d)
    eye = jnp.eye(d, dtype=f32)
    Linv = jax.vmap(
        lambda Lk: jax.scipy.linalg.solve_triangular(Lk, eye, lower=True))(L)
    logdet = 2.0 * jnp.sum(
        jnp.log(jnp.abs(jnp.diagonal(L, axis1=1, axis2=2))), axis=1)  # (K,)
    const = (-0.5 * (d * jnp.log(2.0 * jnp.pi) + logdet)).reshape(K, 1)
    c = jnp.einsum('kab,kb->ka', Linv, t_means)                     # (K, d)
    linv_flat = Linv.reshape(K, d * d)                              # (K, d*d)
    obs_t = obs.T                                                   # (d, N)

    # --- Pass 1: unnormalized P_raw^T (K, N), tiled over samples ------------
    t1 = N if N <= _P1_TILE_MAX else _P1_TILE_MAX
    p_raw_t = pl.pallas_call(
        _p_raw_kernel,
        out_shape=jax.ShapeDtypeStruct((K, N), f32),
        grid_spec=pltpu.PrefetchScalarGridSpec(
            num_scalar_prefetch=0,
            grid=(pl.cdiv(N, t1),),
            in_specs=[pl.BlockSpec((d, t1), lambda i: (0, i)),
                      pl.BlockSpec((K, d * d), lambda i: (0, 0)),
                      pl.BlockSpec((K, d), lambda i: (0, 0)),
                      pl.BlockSpec((K, 1), lambda i: (0, 0))],
            out_specs=pl.BlockSpec((K, t1), lambda i: (0, i)),
        ),
        compiler_params=pltpu.CompilerParams(
            dimension_semantics=("parallel",),
            vmem_limit_bytes=_VMEM_LIMIT),
    )(obs_t, linv_flat, c, const)

    # --- Fold the per-component sample normalization into S -----------------
    #   P = P_raw @ diag(1/colsum)  =>  Q = P S P^T = P_raw @ S' @ P_raw^T
    # (colsum reduce of the (K, N) array costs 16*N bytes of HBM read: negligible
    #  next to the 4*N^2-byte Q writeback, and keeps Pass 1 fully parallel.)
    colsum = jnp.sum(p_raw_t, axis=1)                               # (K,)
    s = jnp.exp(t_S_matrix)
    s = s / jnp.sum(s)
    inv = 1.0 / colsum
    s_prime_t = (s * inv[:, None] * inv[None, :]).T                 # (K, K)

    # --- Pass 2: tiled Q = P_raw @ S' @ P_raw^T (no pads, no output slice) --
    t2 = N if N <= _Q_TILE_MAX else _Q_TILE_MAX
    nt = pl.cdiv(N, t2)
    q = pl.pallas_call(
        _q_tile_kernel,
        out_shape=jax.ShapeDtypeStruct((N, N), q_dtype),
        grid_spec=pltpu.PrefetchScalarGridSpec(
            num_scalar_prefetch=0,
            grid=(nt, nt),
            in_specs=[pl.BlockSpec((K, K), lambda i, j: (0, 0)),
                      pl.BlockSpec((K, t2), lambda i, j: (0, i)),
                      pl.BlockSpec((K, t2), lambda i, j: (0, j))],
            out_specs=pl.BlockSpec((t2, t2), lambda i, j: (i, j)),
        ),
        compiler_params=pltpu.CompilerParams(
            dimension_semantics=("parallel", "parallel"),
            vmem_limit_bytes=_VMEM_LIMIT),
    )(s_prime_t, p_raw_t, p_raw_t)

    return q


# ----------------------------------------------------------------------------
# Pure-JAX reference mirroring the PyTorch forward, for verification.
# ----------------------------------------------------------------------------
def _reference_forward(obs, t_means, t_covars, t_S_matrix):
    d = obs.shape[1]
    L = jnp.tril(t_covars)
    cov = L @ jnp.swapaxes(L, 1, 2)
    sinv = jnp.linalg.inv(cov)
    _, logdet = jnp.linalg.slogdet(cov)
    diff = obs[:, None, :] - t_means[None, :, :]                    # (N, K, d)
    quad = jnp.einsum('nka,kab,nkb->nk', diff, sinv, diff)          # (N, K)
    logp = -0.5 * (d * jnp.log(2.0 * jnp.pi) + logdet)[None, :] - 0.5 * quad
    P = jnp.exp(logp)
    P = P / P.sum(axis=0, keepdims=True)
    S = jnp.exp(t_S_matrix)
    S = S / S.sum()
    return P @ S @ P.T


def _make_inputs(key, n_components, n_dimensions, sample_size):
    k1, k2, k3, k4, k5 = jax.random.split(key, 5)
    startprob = jax.nn.softmax(jax.random.normal(k1, (n_components,)))
    transmat = jax.nn.softmax(
        jax.random.normal(k2, (n_components, n_components)), axis=1)
    means = jax.random.normal(k3, (n_components, n_dimensions))
    A = jax.random.normal(k4, (n_components, n_dimensions, n_dimensions))
    covars = A @ jnp.swapaxes(A, 1, 2) + n_dimensions * jnp.eye(n_dimensions)[None]
    # Module parameters (as in __init__):
    t_means = means
    t_covars = jnp.linalg.cholesky(covars)                          # est_covars
    t_S_matrix = jnp.log(startprob[:, None] * transmat)             # log(diag(pi) @ A)
    obs = jax.random.normal(k5, (sample_size, n_dimensions))
    return obs, t_means, t_covars, t_S_matrix


if __name__ == "__main__":
    forward = jax.jit(discrete_model_forward)

    # Small shapes consistent with the module's __init__ / forward.
    obs, t_means, t_covars, t_S_matrix = _make_inputs(
        jax.random.PRNGKey(0), n_components=4, n_dimensions=3, sample_size=8)
    q = jax.block_until_ready(forward(obs, t_means, t_covars, t_S_matrix))
    q_ref = np.asarray(_reference_forward(obs, t_means, t_covars, t_S_matrix))
    np.testing.assert_allclose(np.asarray(q), q_ref, rtol=1e-3, atol=1e-6)

    # Non-tile-multiple N exercises the cdiv grid / masked partial edge tiles.
    obs, t_means, t_covars, t_S_matrix = _make_inputs(
        jax.random.PRNGKey(0), n_components=4, n_dimensions=3, sample_size=1300)
    q = jax.block_until_ready(forward(obs, t_means, t_covars, t_S_matrix))
    q_ref = np.asarray(_reference_forward(obs, t_means, t_covars, t_S_matrix))
    np.testing.assert_allclose(np.asarray(q), q_ref, rtol=5e-3, atol=1e-12)

    print("KERNEL_OK")
</pallas_src>

<mosaic_0001>
module attributes {stable_mosaic.version = 11 : i64} {
  func.func @_p_raw_kernel(%arg0: i32, %arg1: memref<3x8xf32, #tpu.memory_space<vmem>>, %arg2: memref<4x9xf32, #tpu.memory_space<vmem>>, %arg3: memref<4x3xf32, #tpu.memory_space<vmem>>, %arg4: memref<4x1xf32, #tpu.memory_space<vmem>>, %arg5: memref<4x8xf32, #tpu.memory_space<vmem>>) attributes {dimension_semantics = [#tpu.dimension_semantics<parallel>], iteration_bounds = array<i64: 1>, scalar_prefetch = 0 : i64, scratch_operands = 0 : i64, tpu.core_type = #tpu.core_type<tc>, window_params = [{transform_indices = @transform_0, window_bounds = array<i64: 3, 8>}, {pipeline_mode = #tpu.pipeline_mode<synchronous>, transform_indices = @transform_1, window_bounds = array<i64: 4, 9>}, {pipeline_mode = #tpu.pipeline_mode<synchronous>, transform_indices = @transform_2, window_bounds = array<i64: 4, 3>}, {pipeline_mode = #tpu.pipeline_mode<synchronous>, transform_indices = @transform_3, window_bounds = array<i64: 4, 1>}, {transform_indices = @transform_4, window_bounds = array<i64: 4, 8>}]} {
    %c0 = arith.constant 0 : index
    %c0_0 = arith.constant 0 : index
    %0 = vector.load %arg1[%c0, %c0_0] : memref<3x8xf32, #tpu.memory_space<vmem>>, vector<3x8xf32>
    %c0_1 = arith.constant 0 : index
    %c0_2 = arith.constant 0 : index
    %1 = vector.load %arg2[%c0_1, %c0_2] : memref<4x9xf32, #tpu.memory_space<vmem>>, vector<4x9xf32>
    %c0_3 = arith.constant 0 : index
    %c0_4 = arith.constant 0 : index
    %2 = vector.load %arg3[%c0_3, %c0_4] : memref<4x3xf32, #tpu.memory_space<vmem>>, vector<4x3xf32>
    %c0_5 = arith.constant 0 : index
    %c0_6 = arith.constant 0 : index
    %3 = vector.load %arg4[%c0_5, %c0_6] : memref<4x1xf32, #tpu.memory_space<vmem>>, vector<4x1xf32>
    %cst = arith.constant 0.000000e+00 : f32
    %4 = vector.broadcast %cst : f32 to vector<4x8xf32>
    %cst_7 = arith.constant 0.000000e+00 : f32
    %5 = vector.broadcast %cst_7 : f32 to vector<4x8xf32>
    %6 = vector.extract_strided_slice %1 {offsets = [0, 0], sizes = [4, 1], strides = [1, 1]} : vector<4x9xf32> to vector<4x1xf32>
    %7 = vector.extract_strided_slice %0 {offsets = [0, 0], sizes = [1, 8], strides = [1, 1]} : vector<3x8xf32> to vector<1x8xf32>
    %8 = vector.broadcast %6 : vector<4x1xf32> to vector<4x8xf32>
    %9 = vector.broadcast %7 : vector<1x8xf32> to vector<4x8xf32>
    %10 = arith.mulf %8, %9 : vector<4x8xf32>
    %11 = arith.addf %5, %10 : vector<4x8xf32>
    %12 = vector.extract_strided_slice %2 {offsets = [0, 0], sizes = [4, 1], strides = [1, 1]} : vector<4x3xf32> to vector<4x1xf32>
    %13 = vector.broadcast %12 : vector<4x1xf32> to vector<4x8xf32>
    %14 = arith.subf %11, %13 : vector<4x8xf32>
    %15 = arith.mulf %14, %14 : vector<4x8xf32>
    %16 = arith.addf %4, %15 : vector<4x8xf32>
    %cst_8 = arith.constant 0.000000e+00 : f32
    %17 = vector.broadcast %cst_8 : f32 to vector<4x8xf32>
    %18 = vector.extract_strided_slice %1 {offsets = [0, 3], sizes = [4, 1], strides = [1, 1]} : vector<4x9xf32> to vector<4x1xf32>
    %19 = vector.extract_strided_slice %0 {offsets = [0, 0], sizes = [1, 8], strides = [1, 1]} : vector<3x8xf32> to vector<1x8xf32>
    %20 = vector.broadcast %18 : vector<4x1xf32> to vector<4x8xf32>
    %21 = vector.broadcast %19 : vector<1x8xf32> to vector<4x8xf32>
    %22 = arith.mulf %20, %21 : vector<4x8xf32>
    %23 = arith.addf %17, %22 : vector<4x8xf32>
    %24 = vector.extract_strided_slice %1 {offsets = [0, 4], sizes = [4, 1], strides = [1, 1]} : vector<4x9xf32> to vector<4x1xf32>
    %25 = vector.extract_strided_slice %0 {offsets = [1, 0], sizes = [1, 8], strides = [1, 1]} : vector<3x8xf32> to vector<1x8xf32>
    %26 = vector.broadcast %24 : vector<4x1xf32> to vector<4x8xf32>
    %27 = vector.broadcast %25 : vector<1x8xf32> to vector<4x8xf32>
    %28 = arith.mulf %26, %27 : vector<4x8xf32>
    %29 = arith.addf %23, %28 : vector<4x8xf32>
    %30 = vector.extract_strided_slice %2 {offsets = [0, 1], sizes = [4, 1], strides = [1, 1]} : vector<4x3xf32> to vector<4x1xf32>
    %31 = vector.broadcast %30 : vector<4x1xf32> to vector<4x8xf32>
    %32 = arith.subf %29, %31 : vector<4x8xf32>
    %33 = arith.mulf %32, %32 : vector<4x8xf32>
    %34 = arith.addf %16, %33 : vector<4x8xf32>
    %cst_9 = arith.constant 0.000000e+00 : f32
    %35 = vector.broadcast %cst_9 : f32 to vector<4x8xf32>
    %36 = vector.extract_strided_slice %1 {offsets = [0, 6], sizes = [4, 1], strides = [1, 1]} : vector<4x9xf32> to vector<4x1xf32>
    %37 = vector.extract_strided_slice %0 {offsets = [0, 0], sizes = [1, 8], strides = [1, 1]} : vector<3x8xf32> to vector<1x8xf32>
    %38 = vector.broadcast %36 : vector<4x1xf32> to vector<4x8xf32>
    %39 = vector.broadcast %37 : vector<1x8xf32> to vector<4x8xf32>
    %40 = arith.mulf %38, %39 : vector<4x8xf32>
    %41 = arith.addf %35, %40 : vector<4x8xf32>
    %42 = vector.extract_strided_slice %1 {offsets = [0, 7], sizes = [4, 1], strides = [1, 1]} : vector<4x9xf32> to vector<4x1xf32>
    %43 = vector.extract_strided_slice %0 {offsets = [1, 0], sizes = [1, 8], strides = [1, 1]} : vector<3x8xf32> to vector<1x8xf32>
    %44 = vector.broadcast %42 : vector<4x1xf32> to vector<4x8xf32>
    %45 = vector.broadcast %43 : vector<1x8xf32> to vector<4x8xf32>
    %46 = arith.mulf %44, %45 : vector<4x8xf32>
    %47 = arith.addf %41, %46 : vector<4x8xf32>
    %48 = vector.extract_strided_slice %1 {offsets = [0, 8], sizes = [4, 1], strides = [1, 1]} : vector<4x9xf32> to vector<4x1xf32>
    %49 = vector.extract_strided_slice %0 {offsets = [2, 0], sizes = [1, 8], strides = [1, 1]} : vector<3x8xf32> to vector<1x8xf32>
    %50 = vector.broadcast %48 : vector<4x1xf32> to vector<4x8xf32>
    %51 = vector.broadcast %49 : vector<1x8xf32> to vector<4x8xf32>
    %52 = arith.mulf %50, %51 : vector<4x8xf32>
    %53 = arith.addf %47, %52 : vector<4x8xf32>
    %54 = vector.extract_strided_slice %2 {offsets = [0, 2], sizes = [4, 1], strides = [1, 1]} : vector<4x3xf32> to vector<4x1xf32>
    %55 = vector.broadcast %54 : vector<4x1xf32> to vector<4x8xf32>
    %56 = arith.subf %53, %55 : vector<4x8xf32>
    %57 = arith.mulf %56, %56 : vector<4x8xf32>
    %58 = arith.addf %34, %57 : vector<4x8xf32>
    %cst_10 = arith.constant 5.000000e-01 : f32
    %59 = vector.broadcast %cst_10 : f32 to vector<4x8xf32>
    %60 = arith.mulf %59, %58 : vector<4x8xf32>
    %61 = vector.broadcast %3 : vector<4x1xf32> to vector<4x8xf32>
    %62 = arith.subf %61, %60 : vector<4x8xf32>
    %63 = math.exp %62 : vector<4x8xf32>
    %c0_11 = arith.constant 0 : index
    %c0_12 = arith.constant 0 : index
    %64 = vector.load %arg5[%c0_11, %c0_12] : memref<4x8xf32, #tpu.memory_space<vmem>>, vector<4x8xf32>
    tpu.vector_store %arg5[%c0_11, %c0_12], %63 {strides = array<i32>} : memref<4x8xf32, #tpu.memory_space<vmem>>, vector<4x8xf32>,
    return
  }
  func.func @transform_0(%arg0: i32) -> (i32, i32) {
    %c0_i32 = arith.constant 0 : i32
    %c0_i32_0 = arith.constant 0 : i32
    return %c0_i32, %arg0 : i32, i32
  }
  func.func @transform_1(%arg0: i32) -> (i32, i32) {
    %c0_i32 = arith.constant 0 : i32
    %c0_i32_0 = arith.constant 0 : i32
    %c0_i32_1 = arith.constant 0 : i32
    return %c0_i32, %c0_i32_0 : i32, i32
  }
  func.func @transform_2(%arg0: i32) -> (i32, i32) {
    %c0_i32 = arith.constant 0 : i32
    %c0_i32_0 = arith.constant 0 : i32
    %c0_i32_1 = arith.constant 0 : i32
    return %c0_i32, %c0_i32_0 : i32, i32
  }
  func.func @transform_3(%arg0: i32) -> (i32, i32) {
    %c0_i32 = arith.constant 0 : i32
    %c0_i32_0 = arith.constant 0 : i32
    %c0_i32_1 = arith.constant 0 : i32
    return %c0_i32, %c0_i32_0 : i32, i32
  }
  func.func @transform_4(%arg0: i32) -> (i32, i32) {
    %c0_i32 = arith.constant 0 : i32
    %c0_i32_0 = arith.constant 0 : i32
    return %c0_i32, %arg0 : i32, i32
  }
}

module attributes {stable_mosaic.version = 11 : i64} {
  func.func @_q_tile_kernel(%arg0: i32, %arg1: i32, %arg2: memref<4x4xf32, #tpu.memory_space<vmem>>, %arg3: memref<4x8xf32, #tpu.memory_space<vmem>>, %arg4: memref<4x8xf32, #tpu.memory_space<vmem>>, %arg5: memref<8x8xf32, #tpu.memory_space<vmem>>) attributes {dimension_semantics = [#tpu.dimension_semantics<parallel>, #tpu.dimension_semantics<parallel>], iteration_bounds = array<i64: 1, 1>, scalar_prefetch = 0 : i64, scratch_operands = 0 : i64, tpu.core_type = #tpu.core_type<tc>, window_params = [{pipeline_mode = #tpu.pipeline_mode<synchronous>, transform_indices = @transform_0, window_bounds = array<i64: 4, 4>}, {transform_indices = @transform_1, window_bounds = array<i64: 4, 8>}, {transform_indices = @transform_2, window_bounds = array<i64: 4, 8>}, {transform_indices = @transform_3, window_bounds = array<i64: 8, 8>}]} {
    %c0 = arith.constant 0 : index
    %c0_0 = arith.constant 0 : index
    %0 = vector.load %arg2[%c0, %c0_0] : memref<4x4xf32, #tpu.memory_space<vmem>>, vector<4x4xf32>
    %c0_1 = arith.constant 0 : index
    %c0_2 = arith.constant 0 : index
    %1 = vector.load %arg3[%c0_1, %c0_2] : memref<4x8xf32, #tpu.memory_space<vmem>>, vector<4x8xf32>
    %cst = arith.constant dense<0.000000e+00> : vector<4x8xf32>
    %2 = tpu.matmul %0, %1, %cst {dimension_numbers = #tpu.dot_dimension_numbers<[1], [0], [0], [1], [0, 0, 1, 1], [], []>} : vector<4x4xf32>, vector<4x8xf32>, vector<4x8xf32> -> vector<4x8xf32>
    %c0_3 = arith.constant 0 : index
    %c0_4 = arith.constant 0 : index
    %3 = vector.load %arg4[%c0_3, %c0_4] : memref<4x8xf32, #tpu.memory_space<vmem>>, vector<4x8xf32>
    %cst_5 = arith.constant dense<0.000000e+00> : vector<8x8xf32>
    %4 = tpu.matmul %2, %3, %cst_5 {dimension_numbers = #tpu.dot_dimension_numbers<[0], [0], [1], [1], [0, 1, 1, 1], [], []>} : vector<4x8xf32>, vector<4x8xf32>, vector<8x8xf32> -> vector<8x8xf32>
    %c0_6 = arith.constant 0 : index
    %c0_7 = arith.constant 0 : index
    %5 = vector.load %arg5[%c0_6, %c0_7] : memref<8x8xf32, #tpu.memory_space<vmem>>, vector<8x8xf32>
    tpu.vector_store %arg5[%c0_6, %c0_7], %4 {strides = array<i32>} : memref<8x8xf32, #tpu.memory_space<vmem>>, vector<8x8xf32>,
    return
  }
  func.func @transform_0(%arg0: i32, %arg1: i32) -> (i32, i32) {
    %c0_i32 = arith.constant 0 : i32
    %c0_i32_0 = arith.constant 0 : i32
    %c0_i32_1 = arith.constant 0 : i32
    return %c0_i32, %c0_i32_0 : i32, i32
  }
  func.func @transform_1(%arg0: i32, %arg1: i32) -> (i32, i32) {
    %c0_i32 = arith.constant 0 : i32
    %c0_i32_0 = arith.constant 0 : i32
    return %c0_i32, %arg0 : i32, i32
  }
  func.func @transform_2(%arg0: i32, %arg1: i32) -> (i32, i32) {
    %c0_i32 = arith.constant 0 : i32
    %c0_i32_0 = arith.constant 0 : i32
    return %c0_i32, %arg1 : i32, i32
  }
  func.func @transform_3(%arg0: i32, %arg1: i32) -> (i32, i32) {
    %c0_i32 = arith.constant 0 : i32
    return %arg0, %arg1 : i32, i32
  }
}

</mosaic_0001>

<bundles_post_ra>
// kernel: custom-call.2
= control target key start
LH: loop header
LB: loop body
LE: loop exit
PB: predicated region body
PF: predicated region fallthrough
CT: control target
= control target key end

     0   :  { %s343_s6 = smov 0   ;;  %s345_s7 = smov 0   ;;  %s390_s0 = inlined_call_operand.vmem [shape: f32[4,1,3,3], index: 0, kind: input, shape index: {}]   ;;  %s391_s1 = inlined_call_operand.vmem [shape: f32[4,1,3,3], index: 1, kind: output, shape index: {}]  }
   0x1   :  { %s347_s8 = smov 0  }
   0x2 LB: > { %s269_s9 = sadd.s32 4294967295, %s330_s8   ;;  %s33_s10 = sadd.s32 1, %s326_s7  ;;  %s330_s8 = sphi %s347_s8, %s7_s8   ;;  %s326_s7 = sphi %s345_s7, %s393_s7   ;;  %s322_s6 = sphi %s343_s6, %s392_s6  }
   0x3   : > { %p35_p0 = scmp.ge.s32.totalorder %s33_s10, 4  ;;  %p271_p1 = scmp.ge.s32.totalorder %s330_s8, 4 }
   0x4   : > { %s49_s11 = sand.u32 (!%p271_p1), 1, %s330_s8   ;;  %s273_s12 = sshll.u32 (!%p271_p1), %s326_s7, 2 }
   0x5   : > { %s395_s10 = smov (%p35_p0, %s33_s10), 0  ;;  %47 = sbr.rel (%p271_p1) target bundleno = 12 (0xc), region = 16 }
   0x6   : > { %s272_s13 = sshll.u32 (!%p271_p1), %s49_s11, 2  ;;  %s56_s16 = scalar_lea.vmem (!%p271_p1), %s390_s0, %s273_s12 }
   0x7   : > { %v72_v0 = vld [vmem:[%s56_s16] sm:$0xf] (!%p271_p1)  ;;  %s51_s17 = scalar_lea.vmem (!%p271_p1), [#allocation1], %s272_s13 }
   0x8   : > { %73 = vst [vmem:[%s51_s17] sm:$0xf] (!%p271_p1), %v72_v0 }
   0xc PF: > { %p274_p2 = scmp.ge.s32.totalorder %s330_s8, 1  ;;  %p89_p3 = scmp.lt.s32.totalorder %s330_s8, 5 }
   0xe   : > { %p90_p4 = pnand %p274_p2, %p89_p3 }
  0x10   : > { %93 = sbr.rel (%p90_p4) target bundleno = 511 (0x1ff), region = 50 }
  0x17   : > { %s370_s18 = sand.u32 1, %s269_s9   ;;  %v111_v1 = vlaneseq  ;;  %v332_v11 = vmov -1.0   ;;  %s278_s22 = sshll.u32 %s322_s6, 2 }
  0x18   : > { %s275_s19 = sshll.u32 %s370_s18, 2  ;;  %s178_s25 = scalar_lea.vmem %s391_s1, %s278_s22 }
  0x19   : > { %s102_s20 = scalar_lea.vmem [#allocation1], %s275_s19  ;;  %v112_v3 = vand.u32 127, %v111_v1  ;;  %v115_v4 = vshrl.u32 %v111_v1, 7  ;;  %s106_s21 = scalar_lea.vmem [#allocation3], %s275_s19 }
  0x1a   : > { %v109_v2 = vld [vmem:[%s102_s20] sm:$0xf] }
  0x1b   : > { %110 = vst [vmem:[#allocation0] sm:$0xf] %v109_v2  ;;  %vm113_vm0 = vcmp.lt.s32.totalorder %v112_v3, 3  ;;  %vm122_vm1 = vcmp.ge.s32.totalorder %v115_v4, %v112_v3  ;;  %vm117_vm2 = vcmp.eq.s32.totalorder %v115_v4, %v112_v3  ;;  %vm136_vm4 = vcmp.eq.s32.totalorder %v112_v3, 0 }
  0x1c   : > { %vm123_vm3 = vmand %vm122_vm1, %vm113_vm0  ;;  %vm133_vm5 = vcmp.eq.s32.totalorder %v112_v3, %v115_v4  ;;  %v137_v12 = vsel %vm136_vm4, 1.0, %v332_v11  ;;  %vm144_vm6 = vcmp.eq.s32.totalorder %v112_v3, 1  ;;  %vm154_vm7 = vcmp.eq.s32.totalorder %v112_v3, 2 }
  0x1d   : > { %v138_v13 = vsel %vm133_vm5, %v137_v12, 0.0 }
  0x22   : > { %v118_v5 = vld [vmem:[#allocation0] sm:$0xff] }
  0x23   : > { %v119_v6 = vsel %vm117_vm2, %v118_v5, 0.0  ;;  %v124_v7 = vsel %vm123_vm3, %v118_v5, 0.0 }
  0x24   : > { %120 = vadd.xlane.f32.xlu0 %v119_v6 }
  0xb1   : > { %v121_v8 = vpop.xlane.xlu0 %120 }
  0xb2   : > { %306 = vrcp.f32 %v121_v8  ;;  %vm161_vm8 = vweird.f32 %v121_v8 }
  0xbc   : > { %v307_v9 = vpop.eup %306 }
  0xbd   : > { %v126_v10 = vmul.f32 %v307_v9, %v124_v7 }
  0xbf   : > { %127 = vst [vmem:[#allocation4] sm:$0xff] %v126_v10 }
  0xc6   : > { %v140_v14 = vld [vmem:[#allocation4 + $0x1] ss:$0 sm:$0xff]  ;;  %v150_v17 = vld [vmem:[#allocation4 + $0x2] ss:$0 sm:$0xff] }
  0xc7   : > { %v141_v15 = vxor.u32 2147483648, %v140_v14  ;;  %v151_v19 = vxor.u32 2147483648, %v150_v17 }
  0xc9   : > { %v145_v16 = vmul.f32 %v141_v15, %v138_v13 }
  0xcb   : > { %146 = vadd.xlane.f32.xlu0 %v145_v16 }
 0x158   : > { %v147_v18 = vpop.xlane.xlu0 %146 }
 0x159   : > { %v148_v20 = vsel %vm144_vm6, %v147_v18, %v138_v13 }
 0x15a   : > { %v155_v21 = vmul.f32 %v151_v19, %v148_v20 }
 0x15c   : > { %156 = vadd.xlane.f32.xlu1 %v155_v21 }
 0x1e9   : > { %v157_v22 = vpop.xlane.xlu1 %156 }
 0x1ea   : > { %v158_v23 = vsel %vm154_vm7, %v157_v22, %v148_v20 }
 0x1eb   : > { %v160_v24 = vmul.f32 %v307_v9, %v158_v23 }
 0x1ed   : > { %v162_v25 = vsel %vm161_vm8, %v158_v23, %v160_v24 }
 0x1ee   : > { %163 = vst [vmem:[#allocation2] sm:$0xff] %v162_v25 }
 0x1f5   : > { %v167_v26 = vld [vmem:[#allocation2] sm:$0xf] }
 0x1f6   : > { %169 = vst [vmem:[%s106_s21] sm:$0xf] %v167_v26 }
 0x1fd   : > { %v194_v27 = vld [vmem:[%s106_s21] sm:$0xf] }
 0x1fe   : > { %195 = vst [vmem:[%s178_s25] sm:$0xf] %v194_v27 }
 0x1ff PF: > { %s7_s8 = sadd.s32 1, %s330_s8   ;;  %s392_s6 = smov %s326_s7 }
 0x200   : > { %p4_p5 = scmp.ge.s32.totalorder %s7_s8, 6   ;;  %s393_s7 = smov %s395_s10 }
 0x202   :  { %6 = sbr.rel (!%p4_p5) target bundleno = 2 (0x2), region = 112 }

// kernel: discrete_model_forward.2
= control target key start
LH: loop header
LB: loop body
LE: loop exit
PB: predicated region body
PF: predicated region fallthrough
CT: control target
= control target key end

     0   :  { %v127_v0 = vmov 6   ;;  %v128_v1 = vmov 3   ;;  %v129_v3 = vmov 7   ;;  %v130_v4 = vmov 4   ;;  %s175_s1 = inlined_call_operand.vmem [shape: f32[4,9], index: 1, kind: input, shape index: {}]   ;;  %s176_s2 = inlined_call_operand.vmem [shape: f32[4,3], index: 2, kind: input, shape index: {}]   ;;  %s177_s3 = inlined_call_operand.vmem [shape: f32[4,1], index: 3, kind: input, shape index: {}]   ;;  %s178_s0 = inlined_call_operand.vmem [shape: f32[3,8], index: 0, kind: input, shape index: {}]   ;;  %s179_s4 = inlined_call_operand.vmem [shape: f32[4,8], index: 4, kind: output, shape index: {}]  }
   0x1   :  { %117 = vset.pattern.permute.xlu1 %v127_v0  ;;  %115 = vset.pattern.permute.xlu0 %v128_v1  ;;  %v18_v2 = vld [vmem:[%s175_s1] sm:$0xf]  ;;  %v131_v5 = vmov 0   ;;  %v132_v6 = vmov 8   ;;  %v133_v8 = vmov 2   ;;  %v134_v9 = vmov 1  }
   0x2   :  { %64 = vperm.xlu1 %117, %v18_v2   ;;  %41 = vperm.xlu0 %115, %v18_v2   ;;  %v19_v7 = vld [vmem:[%s176_s2] sm:$0xf]  ;;  %v26_v11 = vlaneseq  ;;  %vm101_vm0 = vcmask 60416  }
   0x3   :  { %v20_v10 = vld [vmem:[%s177_s3] sm:$0xf] }
   0x4   :  { %v27_v12 = vshrl.u32 %v26_v11, 7  ;;  %v17_v18 = vld [vmem:[%s178_s0] sm:$0x7] }
   0x6   :  { %118 = vset.pattern.permute.xlu1 %v129_v3  ;;  %116 = vset.pattern.permute.xlu0 %v130_v4  ;;  %v52_v15 = vsub.s32 1, %v27_v12  ;;  %v28_v16 = vsub.s32 0, %v27_v12  ;;  %v81_v17 = vsub.s32 2, %v27_v12 }
   0x7   :  { %70 = vperm.xlu1 %118, %v18_v2   ;;  %47 = vperm.xlu0 %116, %v18_v2  }
   0x8   :  { %v53_v21 = vrot.slane %v17_v18, %v52_v15  ;;  %v29_v22 = vrot.slane %v17_v18, %v28_v16  ;;  %v82_v23 = vrot.slane %v17_v18, %v81_v17 }
   0xb   :  { %119 = vset.pattern.permute.xlu1 %v131_v5  ;;  %120 = vset.pattern.permute.xlu0 %v132_v6 }
   0xc   :  { %23 = vperm.xlu1 %119, %v18_v2   ;;  %76 = vperm.xlu0 %120, %v18_v2  }
  0x10   :  { %34 = vperm.xlu1 %119, %v19_v7   ;;  %122 = vset.pattern.permute.xlu0 %v133_v8 }
  0x11   :  { %86 = vperm.xlu0 %122, %v19_v7  }
  0x14   :  { %121 = vset.pattern.permute.xlu1 %v134_v9 }
  0x15   :  { %57 = vperm.xlu1 %121, %v19_v7   ;;  %124 = vset.pattern.permute.xlu0 %v131_v5 }
  0x19   :  { %123 = vset.pattern.permute.xlu1 %v131_v5 }
  0x1a   :  { %95 = vperm.xlu1 %123, %v20_v10  }
  0x81   :  { %v65_v13 = vpop.permute.xlu1 %64  ;;  %v42_v14 = vpop.permute.xlu0 %41 }
  0x82   :  { %v67_v27 = vmul.f32 %v65_v13, %v29_v22  ;;  %v44_v29 = vmul.f32 %v42_v14, %v29_v22 }
  0x86   :  { %v71_v19 = vpop.permute.xlu1 %70  ;;  %v48_v20 = vpop.permute.xlu0 %47 }
  0x87   :  { %v73_v24 = vmul.f32 %v71_v19, %v53_v21  ;;  %v54_v31 = vmul.f32 %v53_v21, %v48_v20 }
  0x89   :  { %v74_v30 = vadd.f32 %v73_v24, %v67_v27  ;;  %v55_v37 = vadd.f32 %v54_v31, %v44_v29 }
  0x8b   :  { %v24_v25 = vpop.permute.xlu1 %23  ;;  %v77_v26 = vpop.permute.xlu0 %76 }
  0x8c   :  { %v83_v28 = vmul.f32 %v82_v23, %v77_v26  ;;  %v30_v33 = vmul.f32 %v29_v22, %v24_v25 }
  0x8e   :  { %v84_v34 = vadd.f32 %v83_v28, %v74_v30 }
  0x8f   :  { %v35_v32 = vpop.permute.xlu1 %34 }
  0x90   :  { %v87_v35 = vpop.permute.xlu0 %86  ;;  %v37_v36 = vsub.f32 %v30_v33, %v35_v32 }
  0x91   :  { %v89_v39 = vsub.f32 %v84_v34, %v87_v35 }
  0x92   :  { %v38_v41 = vmul.f32 %v37_v36, %v37_v36 }
  0x93   :  { %v90_v43 = vmul.f32 %v89_v39, %v89_v39 }
  0x94   :  { %v58_v38 = vpop.permute.xlu1 %57 }
  0x95   :  { %v60_v40 = vsub.f32 %v55_v37, %v58_v38 }
  0x97   :  { %v61_v42 = vmul.f32 %v60_v40, %v60_v40 }
  0x99   :  { %v62_v44 = vadd.f32 %v61_v42, %v38_v41  ;;  %v96_v46 = vpop.permute.xlu1 %95 }
  0x9b   :  { %v91_v45 = vadd.f32 %v90_v43, %v62_v44 }
  0x9d   :  { %v92_v47 = vmul.f32 0.5, %v91_v45 }
  0x9f   :  { %v98_v48 = vsub.f32 %v96_v46, %v92_v47 }
  0xa1   :  { %v99_v49 = vmul.f32 1.442695, %v98_v48 }
  0xa3   :  { %125 = vpow2.f32 %v99_v49 }
  0xad   :  { %v126_v50 = vpop.eup %125 }
  0xae   :  { %102 = vst.msk [vmem:[%s179_s4] sm:$0xf] %vm101_vm0, %v126_v50 }

// kernel: discrete_model_forward.3
= control target key start
LH: loop header
LB: loop body
LE: loop exit
PB: predicated region body
PF: predicated region fallthrough
CT: control target
= control target key end

     0   :  { %vm21_vm0 = vcmask 1043456   ;;  %vm17_vm1 = vcmask 31744   ;;  %v265_v1 = vmov 0.0   ;;  %vm266_vm2 = vmmov 0   ;;  %s311_s0 = inlined_call_operand.vmem [shape: f32[4,4], index: 0, kind: input, shape index: {}]   ;;  %s312_s1 = inlined_call_operand.vmem [shape: f32[4,8], index: 1, kind: input, shape index: {}, may-alias: {1,2}]   ;;  %s313_s2 = inlined_call_operand.vmem [shape: f32[4,8], index: 2, kind: input, shape index: {}, may-alias: {1,2}]   ;;  %s314_s3 = inlined_call_operand.hbm [shape: f32[8,8], index: 3, kind: output, shape index: {}]  }
   0x1   :  { %v16_v0 = vld [vmem:[%s312_s1] sm:$0xf]  ;;  %228 = vmatprep.subr.mxu0 %v265_v1  ;;  %230 = vmatprep.mubr.msk.f32.mxu0 %vm266_vm2, %v265_v1 }
   0x2   :  { %v15_v2 = vld [vmem:[%s311_s0] sm:$0xf] }
   0x3   :  { %8 = vsyncpa [#allocation3], 0  ;;  %229 = vmatpush3.msk.msra.mxu0 %vm21_vm0, %v16_v0  ;;  %233 = vmatprep.subr.mxu1 %v265_v1  ;;  %v95_v3 = vld [vmem:[%s313_s2] sm:$0xf]  ;;  %s267_s1 = smov [#allocation2]   ;;  %vm204_vm3 = vcmask 64512  }
   0x4   :  { %231 = vmatmul.mubr.msk.f32.vlgmr.msra.gmra.mrb[0].mxu0 %vm17_vm1, %v15_v2  ;;  %235 = vmatprep.mubr.msk.f32.mxu1 %vm266_vm2, %v265_v1  ;;  %s212_s18 = sshll.u32 %s267_s1, 4  ;;  %s213_s18 = int_to_ptr.vmem [resolvable:$true] %s212_s18 }
   0x5   :  { %234 = vmatpush3.msk.msra.mxu1 %vm21_vm0, %v95_v3  ;;  %s241_s0 = scalar_lea.vmem %s213_s18, 128  ;;  %p246_p1 = scmp.lt.s32.totalorder %s213_s18, %s213_s18 }
   0x6   :  { %p242_p0 = scmp.ne.s32.totalorder %s213_s18, %s241_s0  ;;  %p247_p2 = scmp.lt.s32.totalorder %s241_s0, %s241_s0 }
   0x8   :  { %p248_p3 = por %p247_p2, %p246_p1 }
   0xa   :  { %p249_p4 = pnand %p248_p3, %p242_p0 }
  0xd7   :  { %v91_v4 = vpop.f32.mrb[0].mxu0 }
  0xd8   :  { %96 = vxpose.xlu0.b32.start.end [1/1] (short) (narrow) %v91_v4, 8  ;;  %v232_v5 = vpop.f32.mrb[1].mxu0 }
 0x158   :  { %v112_v6 = vpop.trf.xlu0 }
 0x159   :  { %236 = vmatmul.mubr.msk.f32.vlgmr.msra.gmra.mrb[0].mxu1 %vm17_vm1, %v112_v6 }
 0x22c   :  { %v200_v7 = vpop.f32.mrb[0].mxu1 }
 0x22d   :  { %205 = vst.msk [vmem:[#allocation2] sm:$0xff] %vm204_vm3, %v200_v7  ;;  %v237_v8 = vpop.f32.mrb[1].mxu1 }
 0x22e   :  { %252 = shalt.err (!%p249_p4)
}
 0x22f   :  { %s253_s20 = scalar_lea.hbm %s314_s3, 128 }
 0x230   :  { %p254_p5 = scmp.ne.s32.totalorder %s314_s3, %s253_s20  ;;  %p257_p6 = scmp.lt.u32.totalorder %s253_s20, %s314_s3 }
 0x232   :  { %p259_p7 = pnand %p257_p6, %p254_p5 }
 0x234   :  { %262 = shalt.err (!%p259_p7)
}
 0x235   :  { %215 = dma.vmem_to_hbm [thread:$0]  %s213_s18, 128, %s314_s3, [#allocation3]  }
 0x236   :  { %263 = dma.done.wait [#allocation3], 128  }
 0x237   :  { %264 = vsyncadd [#allocation3], 4294967168 }
 0x238   :  { %219 = vsyncpa [#allocation3], 1 }

</bundles_post_ra>
